<compile_context>
chip_gen: v7x
topology: tpu7x:2x2x1
jax: 0.10.0
libtpu: 0.0.40
codegen_flags: <defaults>
</compile_context>

<pallas_src>
import jax
import jax.numpy as jnp
from jax import lax
from jax.experimental import pallas as pl
from jax.experimental.pallas import tpu as pltpu

EPS = 1e-5


def linearseq_kernel(x_ref, w_ref, gb_ref, o_ref, acc_ref):
    k = pl.program_id(1)

    @pl.when(k == 0)
    def _init():
        acc_ref[...] = jnp.zeros_like(acc_ref)

    # Linear (bias intentionally omitted: it cancels in the BN mean
    # subtraction). Weight arrives pre-transposed to (K, N): canonical
    # (M,K)x(K,N) MXU feed, no per-tile transpose.
    acc_ref[...] += jnp.dot(x_ref[...], w_ref[...],
                            preferred_element_type=jnp.float32)

    @pl.when(k == pl.num_programs(1) - 1)
    def _epilogue():
        z = acc_ref[...]
        # BatchNorm1d training-mode batch stats over the (untiled) batch axis,
        # biased variance, eps=1e-5.
        mean = jnp.mean(z, axis=0, keepdims=True)
        centered = z - mean                       # z is dead after this line
        var = jnp.mean(centered * centered, axis=0, keepdims=True)
        scale = gb_ref[0:1, :] * lax.rsqrt(var + EPS)     # rsqrt -> EUP slot
        # ReLU(gamma * (z - mean) * rsqrt(var+eps) + beta): one FMA + max.
        o_ref[...] = jnp.maximum(centered * scale + gb_ref[1:2, :],
                                 0.0).astype(o_ref.dtype)


def _vmem_limit_bytes():
    """Generation-aware scoped-VMEM limit with headroom."""
    cap = 128 * 1024 * 1024
    try:
        info = pltpu.get_tpu_info()
        cap = int(getattr(info, "vmem_capacity_bytes", cap))
    except Exception:
        pass
    # ~96 MiB on v5e/v6e (128 MiB VMEM), ~48 MiB on v7x (64 MiB per TC).
    return min(int(0.75 * cap), 100 * 1024 * 1024)


def _pick_tiles(n, in_units, vmem_limit):
    """Pick (tn, tk): widest lane tile / K tile whose footprint fits VMEM."""
    budget = max(int(0.6 * vmem_limit), 8 * 1024 * 1024)

    def footprint(tn, tk):
        # double-buffered x/W/out tiles + f32 accumulator + packed gamma/beta
        return 4 * (2 * n * tk + 2 * tk * tn + 2 * n * tn + n * tn + 4 * tn)

    # K tile must be the full K or a 128-multiple divisor of it ((8,128) rule).
    k_cands = [in_units] + [tk for tk in (2048, 1024, 512, 256, 128)
                            if tk < in_units and in_units % tk == 0]
    for tn in (256, 128):   # 256 fills the 256-wide MXU on v6e/v7x; 128 = v5e native
        for tk in k_cands:
            if footprint(tn, tk) <= budget:
                return tn, tk
    return 128, k_cands[-1]   # best effort; compiler may still spill


def linear_seq(x, weight, bias=None, gamma=None, beta=None, *,
               tn=None, tk=None, compute_dtype=jnp.float32,
               vmem_limit_bytes=None):
    """x: (N, in_units); weight: (out_units, in_units) (PyTorch convention)."""
    n, in_units = x.shape
    out_units = weight.shape[0]

    if gamma is None:
        gamma = jnp.ones((out_units,), jnp.float32)
    if beta is None:
        beta = jnp.zeros((out_units,), jnp.float32)

    # The Linear bias is exactly cancelled by the BN mean subtraction in
    # training mode, so it is deliberately not used (saves a DMA and a
    # full-tile add per feature tile; forward output identical).
    del bias

    if vmem_limit_bytes is None:
        vmem_limit_bytes = _vmem_limit_bytes()
    auto_tn, auto_tk = _pick_tiles(n, in_units, vmem_limit_bytes)
    tn = tn or auto_tn
    tk = tk or auto_tk
    assert in_units % tk == 0, "K tile must divide in_units"

    # Pad the feature axis to a lane-dense multiple of tn -> unmasked stores,
    # full MXU columns.
    out_p = pl.cdiv(out_units, tn) * tn
    pad = out_p - out_units

    # One-time wrapper transpose to (K, N) layout (constant-foldable for
    # static weights); avoids a per-tile XLU transpose in the kernel.
    w_kn = weight.T
    if pad:
        w_kn = jnp.pad(w_kn, ((0, 0), (0, pad)))
        # Padded gamma MUST stay zero: scale=0 forces the padded columns to
        # exact zeros (var=0 + eps keeps rsqrt finite). Do not pad with ones.
        gamma = jnp.pad(gamma, (0, pad))
        beta = jnp.pad(beta, (0, pad))

    # Pack gamma/beta into a single (2, out_p) operand -> one small DMA/step.
    gb = jnp.stack([gamma.astype(jnp.float32), beta.astype(jnp.float32)], 0)

    x_c = x.astype(compute_dtype)
    w_c = w_kn.astype(compute_dtype)

    grid = (out_p // tn, in_units // tk)   # K axis last, "arbitrary"

    itemsize = jnp.dtype(compute_dtype).itemsize
    cost = pl.CostEstimate(
        flops=2 * n * in_units * out_p,
        transcendentals=out_p,                              # rsqrt per feature
        bytes_accessed=itemsize * (n * in_units             # x
                                   + in_units * out_p)      # W
        + 4 * (2 * out_p + n * out_p),                      # gamma/beta + out
    )

    out = pl.pallas_call(
        linearseq_kernel,
        out_shape=jax.ShapeDtypeStruct((n, out_p), jnp.float32),
        grid=grid,
        in_specs=[
            # Batch axis never tiled -> BN stats exact. x is re-used across
            # feature tiles (constant index along j, so it is not re-fetched).
            pl.BlockSpec((n, tk), lambda j, k: (0, k)),
            # (K, N) weight tile per grid step.
            pl.BlockSpec((tk, tn), lambda j, k: (k, j)),
            # Packed gamma/beta tile.
            pl.BlockSpec((2, tn), lambda j, k: (0, j)),
        ],
        out_specs=pl.BlockSpec((n, tn), lambda j, k: (0, j)),
        scratch_shapes=[pltpu.VMEM((n, tn), jnp.float32)],   # f32 accumulator
        compiler_params=pltpu.CompilerParams(
            dimension_semantics=("parallel", "arbitrary"),
            vmem_limit_bytes=vmem_limit_bytes,
        ),
        cost_estimate=cost,
    )(x_c, w_c, gb)

    return out[:, :out_units] if pad else out


if __name__ == "__main__":
    key = jax.random.PRNGKey(0)
    k_x, k_w, k_b = jax.random.split(key, 3)

    batch = 8           # multiple of 8 (sublane-aligned batch axis)
    in_units = 32
    out_units = 16      # padded to a lane-dense tile inside the wrapper

    # Deterministic synthetic parameters (shapes follow nn.Linear /
    # nn.BatchNorm1d __init__; BN gamma=1, beta=0 as at construction).
    x = jax.random.normal(k_x, (batch, in_units), dtype=jnp.float32)
    bound = 1.0 / (in_units ** 0.5)
    weight = jax.random.uniform(
        k_w, (out_units, in_units), minval=-bound, maxval=bound,
        dtype=jnp.float32)
    bias = jax.random.uniform(
        k_b, (out_units,), minval=-bound, maxval=bound, dtype=jnp.float32)
    gamma = jnp.ones((out_units,), dtype=jnp.float32)
    beta = jnp.zeros((out_units,), dtype=jnp.float32)

    out = linear_seq(x, weight, bias, gamma, beta)
    out = jax.block_until_ready(out)

    # Pure-JAX reference (PyTorch forward semantics, BN training mode).
    z_ref = x @ weight.T + bias
    mean = z_ref.mean(0, keepdims=True)
    var = ((z_ref - mean) ** 2).mean(0, keepdims=True)
    ref = jnp.maximum(gamma * (z_ref - mean) / jnp.sqrt(var + EPS) + beta, 0.0)
    assert out.shape == ref.shape
    assert jnp.allclose(out, ref, atol=1e-4, rtol=1e-4), "mismatch vs reference"

    print("KERNEL_OK")
</pallas_src>

<mosaic_0001>
module attributes {stable_mosaic.version = 11 : i64} {
  func.func @linearseq_kernel(%arg0: i32, %arg1: i32, %arg2: memref<8x32xf32, #tpu.memory_space<vmem>>, %arg3: memref<32x256xf32, #tpu.memory_space<vmem>>, %arg4: memref<2x256xf32, #tpu.memory_space<vmem>>, %arg5: memref<8x256xf32, #tpu.memory_space<vmem>>, %arg6: memref<8x256xf32, #tpu.memory_space<vmem>>) attributes {dimension_semantics = [#tpu.dimension_semantics<parallel>, #tpu.dimension_semantics<arbitrary>], iteration_bounds = array<i64: 1, 1>, scalar_prefetch = 0 : i64, scratch_operands = 1 : i64, tpu.core_type = #tpu.core_type<tc>, window_params = [{transform_indices = @transform_0, window_bounds = array<i64: 8, 32>}, {transform_indices = @transform_1, window_bounds = array<i64: 32, 256>}, {transform_indices = @transform_2, window_bounds = array<i64: 2, 256>}, {transform_indices = @transform_3, window_bounds = array<i64: 8, 256>}]} {
    %c0_i32 = arith.constant 0 : i32
    %0 = arith.cmpi eq, %arg1, %c0_i32 : i32
    %1 = arith.extui %0 : i1 to i32
    %c0_i32_0 = arith.constant 0 : i32
    %2 = arith.cmpi ne, %1, %c0_i32_0 : i32
    scf.if %2 {
      %cst_10 = arith.constant 0.000000e+00 : f32
      %12 = vector.broadcast %cst_10 : f32 to vector<8x256xf32>
      %c0_11 = arith.constant 0 : index
      %c0_12 = arith.constant 0 : index
      %13 = vector.load %arg6[%c0_11, %c0_12] : memref<8x256xf32, #tpu.memory_space<vmem>>, vector<8x256xf32>
      tpu.vector_store %arg6[%c0_11, %c0_12], %12 {strides = array<i32>} : memref<8x256xf32, #tpu.memory_space<vmem>>, vector<8x256xf32>,
    } else {
    }
    %c0 = arith.constant 0 : index
    %c0_1 = arith.constant 0 : index
    %3 = vector.load %arg6[%c0, %c0_1] : memref<8x256xf32, #tpu.memory_space<vmem>>, vector<8x256xf32>
    %c0_2 = arith.constant 0 : index
    %c0_3 = arith.constant 0 : index
    %4 = vector.load %arg2[%c0_2, %c0_3] : memref<8x32xf32, #tpu.memory_space<vmem>>, vector<8x32xf32>
    %c0_4 = arith.constant 0 : index
    %c0_5 = arith.constant 0 : index
    %5 = vector.load %arg3[%c0_4, %c0_5] : memref<32x256xf32, #tpu.memory_space<vmem>>, vector<32x256xf32>
    %cst = arith.constant dense<0.000000e+00> : vector<8x256xf32>
    %6 = tpu.matmul %4, %5, %cst {dimension_numbers = #tpu.dot_dimension_numbers<[1], [0], [0], [1], [0, 0, 1, 1], [], []>} : vector<8x32xf32>, vector<32x256xf32>, vector<8x256xf32> -> vector<8x256xf32>
    %7 = arith.addf %3, %6 : vector<8x256xf32>
    %c0_6 = arith.constant 0 : index
    %c0_7 = arith.constant 0 : index
    %8 = vector.load %arg6[%c0_6, %c0_7] : memref<8x256xf32, #tpu.memory_space<vmem>>, vector<8x256xf32>
    tpu.vector_store %arg6[%c0_6, %c0_7], %7 {strides = array<i32>} : memref<8x256xf32, #tpu.memory_space<vmem>>, vector<8x256xf32>,
    %c0_i32_8 = arith.constant 0 : i32
    %9 = arith.cmpi eq, %arg1, %c0_i32_8 : i32
    %10 = arith.extui %9 : i1 to i32
    %c0_i32_9 = arith.constant 0 : i32
    %11 = arith.cmpi ne, %10, %c0_i32_9 : i32
    scf.if %11 {
      %c0_10 = arith.constant 0 : index
      %c0_11 = arith.constant 0 : index
      %12 = vector.load %arg6[%c0_10, %c0_11] : memref<8x256xf32, #tpu.memory_space<vmem>>, vector<8x256xf32>
      %cst_12 = arith.constant dense<0.000000e+00> : vector<256xf32>
      %13 = vector.multi_reduction <add>, %12, %cst_12 [0] : vector<8x256xf32> to vector<256xf32>
      %14 = vector.shape_cast %13 : vector<256xf32> to vector<1x256xf32>
      %cst_13 = arith.constant 8.000000e+00 : f32
      %15 = vector.broadcast %cst_13 : f32 to vector<1x256xf32>
      %16 = arith.divf %14, %15 : vector<1x256xf32>
      %17 = vector.broadcast %16 : vector<1x256xf32> to vector<8x256xf32>
      %18 = arith.subf %12, %17 : vector<8x256xf32>
      %19 = arith.mulf %18, %18 : vector<8x256xf32>
      %cst_14 = arith.constant dense<0.000000e+00> : vector<256xf32>
      %20 = vector.multi_reduction <add>, %19, %cst_14 [0] : vector<8x256xf32> to vector<256xf32>
      %21 = vector.shape_cast %20 : vector<256xf32> to vector<1x256xf32>
      %cst_15 = arith.constant 8.000000e+00 : f32
      %22 = vector.broadcast %cst_15 : f32 to vector<1x256xf32>
      %23 = arith.divf %21, %22 : vector<1x256xf32>
      %c0_16 = arith.constant 0 : index
      %c0_17 = arith.constant 0 : index
      %24 = vector.load %arg4[%c0_16, %c0_17] : memref<2x256xf32, #tpu.memory_space<vmem>>, vector<1x256xf32>
      %cst_18 = arith.constant 9.99999974E-6 : f32
      %25 = vector.broadcast %cst_18 : f32 to vector<1x256xf32>
      %26 = arith.addf %23, %25 : vector<1x256xf32>
      %27 = math.rsqrt %26 : vector<1x256xf32>
      %28 = arith.mulf %24, %27 : vector<1x256xf32>
      %29 = vector.broadcast %28 : vector<1x256xf32> to vector<8x256xf32>
      %30 = arith.mulf %18, %29 : vector<8x256xf32>
      %c1 = arith.constant 1 : index
      %c0_19 = arith.constant 0 : index
      %31 = vector.load %arg4[%c1, %c0_19] : memref<2x256xf32, #tpu.memory_space<vmem>>, vector<1x256xf32>
      %32 = vector.broadcast %31 : vector<1x256xf32> to vector<8x256xf32>
      %33 = arith.addf %30, %32 : vector<8x256xf32>
      %cst_20 = arith.constant 0.000000e+00 : f32
      %34 = vector.broadcast %cst_20 : f32 to vector<8x256xf32>
      %35 = arith.maximumf %33, %34 : vector<8x256xf32>
      %c0_21 = arith.constant 0 : index
      %c0_22 = arith.constant 0 : index
      %36 = vector.load %arg5[%c0_21, %c0_22] : memref<8x256xf32, #tpu.memory_space<vmem>>, vector<8x256xf32>
      tpu.vector_store %arg5[%c0_21, %c0_22], %35 {strides = array<i32>} : memref<8x256xf32, #tpu.memory_space<vmem>>, vector<8x256xf32>,
    } else {
    }
    return
  }
  func.func @transform_0(%arg0: i32, %arg1: i32) -> (i32, i32) {
    %c0_i32 = arith.constant 0 : i32
    %c0_i32_0 = arith.constant 0 : i32
    return %c0_i32, %arg1 : i32, i32
  }
  func.func @transform_1(%arg0: i32, %arg1: i32) -> (i32, i32) {
    %c0_i32 = arith.constant 0 : i32
    return %arg1, %arg0 : i32, i32
  }
  func.func @transform_2(%arg0: i32, %arg1: i32) -> (i32, i32) {
    %c0_i32 = arith.constant 0 : i32
    %c0_i32_0 = arith.constant 0 : i32
    return %c0_i32, %arg0 : i32, i32
  }
  func.func @transform_3(%arg0: i32, %arg1: i32) -> (i32, i32) {
    %c0_i32 = arith.constant 0 : i32
    %c0_i32_0 = arith.constant 0 : i32
    return %c0_i32, %arg0 : i32, i32
  }
}

</mosaic_0001>

<bundles_post_ra>
// kernel: tpu_custom_call.1
= control target key start
LH: loop header
LB: loop body
LE: loop exit
PB: predicated region body
PF: predicated region fallthrough
CT: control target
= control target key end

     0   :  { %8 = vsyncpa [#allocation4], 0  ;;  %s449_s0 = inlined_call_operand.hbm [shape: f32[8,32], index: 0, kind: input, shape index: {}]   ;;  %s450_s1 = inlined_call_operand.hbm [shape: f32[32,256], index: 1, kind: input, shape index: {}]   ;;  %s451_s2 = inlined_call_operand.hbm [shape: f32[2,256], index: 2, kind: input, shape index: {}]   ;;  %s452_s3 = inlined_call_operand.hbm [shape: f32[8,256], index: 3, kind: output, shape index: {}]  }
   0x1   :  { %9 = vsyncpa [#allocation7], 0 }
   0x2   :  { %10 = vsyncpa [#allocation5], 0  ;;  %s373_s12 = smov [#allocation6]   ;;  %s279_s16 = scalar_lea.hbm %s450_s1, 1024 }
   0x3   :  { %s26_s13 = sshll.u32 %s373_s12, 4  ;;  %p280_p0 = scmp.ne.s32.totalorder %s450_s1, %s279_s16  ;;  %s27_s13 = int_to_ptr.vmem [resolvable:$true] %s26_s13 }
   0x4   :  { %p283_p1 = scmp.lt.u32.totalorder %s279_s16, %s450_s1 }
   0x6   :  { %p285_p2 = pnand %p283_p1, %p280_p0 }
   0x8   :  { %288 = shalt.err (!%p285_p2)
}
   0x9   :  { %s289_s21 = scalar_lea.vmem %s27_s13, 1024  ;;  %p294_p4 = scmp.lt.s32.totalorder %s27_s13, %s27_s13 }
   0xa   :  { %p290_p3 = scmp.ne.s32.totalorder %s27_s13, %s289_s21  ;;  %p295_p5 = scmp.lt.s32.totalorder %s289_s21, %s289_s21 }
   0xc   :  { %p296_p6 = por %p295_p5, %p294_p4 }
   0xe   :  { %p297_p7 = pnand %p296_p6, %p290_p3 }
  0x10   :  { %300 = shalt.err (!%p297_p7)
}
  0x11   :  { %s374_s22 = smov 256   ;;  %s375_s23 = smov 16  }
  0x12   :  { %32 = dma.hbm_to_vmem [thread:$0]  %s450_s1, 1024, %s27_s13, [#allocation7], %s374_s22, %s374_s22, %s375_s23  }
  0x13   :  { %s376_s26 = smov [#allocation3]   ;;  %s377_s28 = smov [#allocation8]  }
  0x14   :  { %s17_s27 = sshll.u32 %s376_s26, 4  ;;  %s39_s29 = sshll.u32 %s377_s28, 4  ;;  %s18_s27 = int_to_ptr.vmem [resolvable:$true] %s17_s27  ;;  %s40_s29 = int_to_ptr.vmem [resolvable:$true] %s39_s29 }
  0x15   :  { %s301_s5 = scalar_lea.hbm %s449_s0, 128 }
  0x16   :  { %p302_p8 = scmp.ne.s32.totalorder %s449_s0, %s301_s5  ;;  %p305_p9 = scmp.lt.u32.totalorder %s301_s5, %s449_s0 }
  0x18   :  { %p307_p10 = pnand %p305_p9, %p302_p8 }
  0x1a   :  { %310 = shalt.err (!%p307_p10)
}
  0x1b   :  { %s311_s1 = scalar_lea.vmem %s18_s27, 128  ;;  %p316_p12 = scmp.lt.s32.totalorder %s18_s27, %s18_s27 }
  0x1c   :  { %p312_p11 = scmp.ne.s32.totalorder %s18_s27, %s311_s1  ;;  %p317_p13 = scmp.lt.s32.totalorder %s311_s1, %s311_s1 }
  0x1e   :  { %p318_p0 = por %p317_p13, %p316_p12 }
  0x20   :  { %p319_p1 = pnand %p318_p0, %p312_p11 }
  0x22   :  { %322 = shalt.err (!%p319_p1)
}
  0x23   :  { %20 = dma.hbm_to_vmem [thread:$0]  %s449_s0, 128, %s18_s27, [#allocation4]  }
  0x24   :  { %s323_s14 = scalar_lea.hbm %s451_s2, 64 }
  0x25   :  { %p324_p2 = scmp.ne.s32.totalorder %s451_s2, %s323_s14  ;;  %p327_p3 = scmp.lt.u32.totalorder %s323_s14, %s451_s2 }
  0x27   :  { %p329_p4 = pnand %p327_p3, %p324_p2 }
  0x29   :  { %332 = shalt.err (!%p329_p4)
}
  0x2a   :  { %s333_s19 = scalar_lea.vmem %s40_s29, 64  ;;  %p338_p6 = scmp.lt.s32.totalorder %s40_s29, %s40_s29 }
  0x2b   :  { %p334_p5 = scmp.ne.s32.totalorder %s40_s29, %s333_s19  ;;  %p339_p7 = scmp.lt.s32.totalorder %s333_s19, %s333_s19 }
  0x2d   :  { %p340_p8 = por %p339_p7, %p338_p6 }
  0x2f   :  { %p341_p9 = pnand %p340_p8, %p334_p5 }
  0x31   :  { %344 = shalt.err (!%p341_p9)
}
  0x32   :  { %42 = dma.hbm_to_vmem [thread:$0]  %s451_s2, 64, %s40_s29, [#allocation7]  }
  0x33   :  { %367 = dma.done.wait [#allocation4], 128  }
  0x34   :  { %368 = vsyncadd [#allocation4], 4294967168 }
  0x35   :  { %369 = dma.done.wait [#allocation7], 1088  }
  0x36   :  { %370 = vsyncadd [#allocation7], 4294966208  ;;  %v378_v0 = vmov 0.0   ;;  %v62_v1 = vld [vmem:[#allocation6 + $0x8] sm:$0xff]  ;;  %v64_v2 = vld [vmem:[#allocation6 + $0x18] sm:$0xff]  ;;  %vm69_vm0 = vcmask 261120   ;;  %v197_v52 = vlaneseq }
  0x37   :  { %137 = vmatprep.mubr.f32.mxu0 %v378_v0  ;;  %v61_v3 = vld [vmem:[#allocation6] sm:$0xff]  ;;  %v259_v4 = vpack.c.bf16 %v64_v2, %v62_v1  ;;  %v63_v5 = vld [vmem:[#allocation6 + $0x10] sm:$0xff]  ;;  %v66_v6 = vld [vmem:[#allocation6 + $0x28] sm:$0xff]  ;;  %v379_v50 = vmov 1966171168   ;;  %s380_s2 = smov [#allocation9]  }
  0x38   :  { %v68_v7 = vld [vmem:[#allocation6 + $0x38] sm:$0xff]  ;;  %v261_v8 = vpack.c.bf16 %v63_v5, %v61_v3  ;;  %v65_v10 = vld [vmem:[#allocation6 + $0x20] sm:$0xff]  ;;  %v67_v11 = vld [vmem:[#allocation6 + $0x30] sm:$0xff]  ;;  %v195_v51 = vunpack.c.l.s4 %v379_v50  ;;  %v198_v54 = vshrl.u32 %v197_v52, 7  ;;  %s248_s21 = sshll.u32 %s380_s2, 4  ;;  %s249_s21 = int_to_ptr.vmem [resolvable:$true] %s248_s21 }
  0x39   :  { %v263_v9 = vpack.c.bf16 %v68_v7, %v66_v6  ;;  %260 = vmatprep.subr.bf16.mxu0 %v259_v4  ;;  %v265_v12 = vpack.c.bf16 %v67_v11, %v65_v10  ;;  %v60_v13 = vld [vmem:[#allocation3] sm:$0xff]  ;;  %v186_v60 = vld [vmem:[#allocation8] ss:$2 sm:$0x3]  ;;  %s345_s22 = scalar_lea.vmem %s249_s21, 256  ;;  %p350_p11 = scmp.lt.s32.totalorder %s249_s21, %s249_s21 }
  0x3a   :  { %262 = vmatpush1.bf16.msra.mxu0 %v261_v8  ;;  %v196_v53 = vunpack.c.0.s8 %v195_v51  ;;  %v213_v62 = vsub.s32 0, %v198_v54  ;;  %v217_v63 = vsub.s32 1, %v198_v54  ;;  %v224_v0 = vld [vmem:[#allocation8 + $0x1] ss:$2 sm:$0x3]  ;;  %p346_p10 = scmp.ne.s32.totalorder %s249_s21, %s345_s22  ;;  %p351_p12 = scmp.lt.s32.totalorder %s345_s22, %s345_s22 }
  0x3b   :  { %264 = vmatprep.subr.bf16.mxu0 %v263_v9 }
  0x3c   :  { %v199_v56 = vsub.s32 %v196_v53, %v198_v54  ;;  %v233_v4 = vrot.slane %v224_v0, %v217_v63  ;;  %v229_v5 = vrot.slane %v224_v0, %v213_v62  ;;  %p352_p13 = por %p351_p12, %p350_p11 }
  0x3e   :  { %266 = vmatpush1.bf16.msra.mxu0 %v265_v12  ;;  %p353_p0 = pnand %p352_p13, %p346_p10 }
  0x41   :  { %258 = vmatmul.mubr.msk.f32.vlgmr.msra.gmra.mrb[0].mxu0 %vm69_vm0, %v60_v13 }
 0x114   :  { %v139_v14 = vpop.f32.mrb[0].mxu0 }
 0x115   :  { %v153_v15 = vrot.slane %v139_v14, 4  ;;  %v141_v16 = vpop.f32.mrb[1].mxu0 }
 0x116   :  { %v159_v17 = vrot.slane %v141_v16, 4 }
 0x117   :  { %v154_v18 = vadd.f32 %v153_v15, %v139_v14 }
 0x118   :  { %v160_v19 = vadd.f32 %v159_v17, %v141_v16 }
 0x119   :  { %v155_v20 = vrot.slane %v154_v18, 2 }
 0x11a   :  { %v161_v21 = vrot.slane %v160_v19, 2 }
 0x11b   :  { %v156_v22 = vadd.f32 %v155_v20, %v154_v18 }
 0x11c   :  { %v162_v23 = vadd.f32 %v161_v21, %v160_v19 }
 0x11d   :  { %v157_v24 = vrot.slane %v156_v22, 1 }
 0x11e   :  { %v163_v25 = vrot.slane %v162_v23, 1 }
 0x11f   :  { %v158_v26 = vadd.f32 %v157_v24, %v156_v22 }
 0x120   :  { %v164_v27 = vadd.f32 %v163_v25, %v162_v23 }
 0x121   :  { %v166_v28 = vmul.f32 0.125, %v158_v26 }
 0x122   :  { %v167_v29 = vmul.f32 0.125, %v164_v27 }
 0x123   :  { %v168_v30 = vsub.f32 %v139_v14, %v166_v28 }
 0x124   :  { %v169_v31 = vsub.f32 %v141_v16, %v167_v29 }
 0x125   :  { %v170_v32 = vmul.f32 %v168_v30, %v168_v30 }
 0x126   :  { %v171_v33 = vmul.f32 %v169_v31, %v169_v31 }
 0x127   :  { %v172_v34 = vrot.slane %v170_v32, 4 }
 0x128   :  { %v178_v35 = vrot.slane %v171_v33, 4 }
 0x129   :  { %v173_v36 = vadd.f32 %v172_v34, %v170_v32 }
 0x12a   :  { %v179_v37 = vadd.f32 %v178_v35, %v171_v33 }
 0x12b   :  { %v174_v38 = vrot.slane %v173_v36, 2 }
 0x12c   :  { %v180_v39 = vrot.slane %v179_v37, 2 }
 0x12d   :  { %v175_v40 = vadd.f32 %v174_v38, %v173_v36 }
 0x12e   :  { %v181_v41 = vadd.f32 %v180_v39, %v179_v37 }
 0x12f   :  { %v176_v42 = vrot.slane %v175_v40, 1 }
 0x130   :  { %v182_v43 = vrot.slane %v181_v41, 1 }
 0x131   :  { %v177_v44 = vadd.f32 %v176_v42, %v175_v40 }
 0x132   :  { %v183_v45 = vadd.f32 %v182_v43, %v181_v41 }
 0x133   :  { %v184_v46 = vmul.f32 0.125, %v177_v44 }
 0x134   :  { %v185_v47 = vmul.f32 0.125, %v183_v45 }
 0x135   :  { %v187_v48 = vadd.f32 1e-05, %v184_v46 }
 0x136   :  { %v188_v49 = vadd.f32 1e-05, %v185_v47 }
 0x137   :  { %275 = vrsqrt.f32 %v187_v48 }
 0x138   :  { %277 = vrsqrt.f32 %v188_v49 }
 0x141   :  { %v276_v55 = vpop.eup %275 }
 0x142   :  { %v278_v57 = vpop.eup %277 }
 0x143   :  { %v193_v58 = vcombine.low %v276_v55, %v278_v57 }
 0x145   :  { %v200_v59 = vrot.slane %v193_v58, %v199_v56 }
 0x147   :  { %v207_v61 = vrot.slane %v200_v59, %v199_v56 }
 0x149   :  { %v209_v1 = vmul.f32 %v207_v61, %v186_v60 }
 0x14b   :  { %v214_v2 = vrot.slane %v209_v1, %v213_v62  ;;  %v218_v3 = vrot.slane %v209_v1, %v217_v63 }
 0x14d   :  { %v222_v6 = vmul.f32 %v218_v3, %v169_v31  ;;  %v221_v7 = vmul.f32 %v214_v2, %v168_v30 }
 0x14f   :  { %v237_v8 = vadd.f32 %v233_v4, %v222_v6  ;;  %v236_v9 = vadd.f32 %v229_v5, %v221_v7 }
 0x151   :  { %v238_v10 = vmax.f32 %v236_v9, 0.0  ;;  %v239_v11 = vmax.f32 %v237_v8, 0.0 }
 0x153   :  { %240 = vst [vmem:[#allocation9] sm:$0xff] %v238_v10  ;;  %241 = vst [vmem:[#allocation9 + $0x8] sm:$0xff] %v239_v11 }
 0x154   :  { %356 = shalt.err (!%p353_p0)
}
 0x155   :  { %s357_s25 = scalar_lea.hbm %s452_s3, 256 }
 0x156   :  { %p358_p1 = scmp.ne.s32.totalorder %s452_s3, %s357_s25  ;;  %p361_p2 = scmp.lt.u32.totalorder %s357_s25, %s452_s3 }
 0x158   :  { %p363_p3 = pnand %p361_p2, %p358_p1 }
 0x15a   :  { %366 = shalt.err (!%p363_p3)
}
 0x15b   :  { %251 = dma.vmem_to_hbm [thread:$0]  %s249_s21, 256, %s452_s3, [#allocation5]  }
 0x15c   :  { %371 = dma.done.wait [#allocation5], 256  }
 0x15d   :  { %372 = vsyncadd [#allocation5], 4294967040 }
 0x15e   :  { %255 = vsyncpa [#allocation4], 1 }
 0x15f   :  { %256 = vsyncpa [#allocation7], 1 }
 0x160   :  { %257 = vsyncpa [#allocation5], 1 }

</bundles_post_ra>
